<compile_context>
chip_gen: v5e
topology: v5e:2x2
jax: 0.10.0
libtpu: 0.0.40
codegen_flags: <defaults>
</compile_context>

<pallas_src>
import numpy as np
import jax
import jax.numpy as jnp
from jax.experimental import pallas as pl
from jax.experimental.pallas import tpu as pltpu


def nnlr_kernel(x_ref, w0c_ref, b0c_ref, w1_ref, b1_ref, w2_ref, b2_ref, out_ref):
    x = x_ref[...]                      # (TM, F)

    # Fused layer 0 + skip path: columns [0:n0) are hidden layer 0, column n0
    # is the linear-regression skip output.  One MXU pass over K=F instead of
    # two.
    n0 = w0c_ref.shape[1] - 1
    h0 = jnp.dot(x, w0c_ref[...], preferred_element_type=jnp.float32) + b0c_ref[...]
    y_lr = h0[:, n0:n0 + 1]             # (TM, 1) skip output (no activation)
    h = jnp.maximum(h0[:, :n0], 0.0)    # ReLU on hidden layer 0

    # Hidden layer 1 (ReLU) and final linear layer.
    h = jnp.maximum(
        jnp.dot(h, w1_ref[...], preferred_element_type=jnp.float32) + b1_ref[...], 0.0)
    h = jnp.dot(h, w2_ref[...], preferred_element_type=jnp.float32) + b2_ref[...]

    out_ref[...] = (h + y_lr).astype(out_ref.dtype)


def _round_up(a, m):
    return (a + m - 1) // m * m


def nnlr_forward(x, params, tm_max=2048):
    """Returns (out, reg_skip, reg_layers) exactly like NNLRModule.forward."""
    w0, b0, w1, b1, w2, b2, ws, bs = params
    batch, num_feature = x.shape
    n0 = w0.shape[1]
    n1 = w1.shape[1]

    # Fuse the skip matmul into layer 0 (free: same MXU pass over K=F).
    w0c = jnp.concatenate([w0, ws], axis=1)   # (F, n0 + 1)
    b0c = jnp.concatenate([b0, bs], axis=1)   # (1, n0 + 1)

    # Batch tiling: large row tiles (per-grid-step overhead ~0.35 us), padded
    # to a whole number of tiles.  Padded rows are sliced off afterwards.
    tm = min(tm_max, _round_up(batch, 8))
    batch_p = _round_up(batch, tm)
    if batch_p != batch:
        x_p = jnp.zeros((batch_p, num_feature), x.dtype).at[:batch].set(x)
    else:
        x_p = x
    grid = (batch_p // tm,)

    flops = 2 * batch_p * (num_feature * (n0 + 1) + n0 * n1 + n1 * 1)
    bytes_accessed = 4 * (x_p.size + batch_p
                          + sum(int(p.size) for p in (w0c, b0c, w1, b1, w2, b2)))

    out = pl.pallas_call(
        nnlr_kernel,
        out_shape=jax.ShapeDtypeStruct((batch_p, 1), jnp.float32),
        grid_spec=pltpu.PrefetchScalarGridSpec(
            num_scalar_prefetch=0,
            grid=grid,
            in_specs=[
                pl.BlockSpec((tm, num_feature), lambda i: (i, 0)),   # x tile
                pl.BlockSpec(w0c.shape, lambda i: (0, 0)),           # resident weights
                pl.BlockSpec(b0c.shape, lambda i: (0, 0)),
                pl.BlockSpec(w1.shape, lambda i: (0, 0)),
                pl.BlockSpec(b1.shape, lambda i: (0, 0)),
                pl.BlockSpec(w2.shape, lambda i: (0, 0)),
                pl.BlockSpec(b2.shape, lambda i: (0, 0)),
            ],
            out_specs=pl.BlockSpec((tm, 1), lambda i: (i, 0)),
        ),
        compiler_params=pltpu.CompilerParams(
            dimension_semantics=("parallel",),        # megacore sharding on v7x
            vmem_limit_bytes=32 * 1024 * 1024,        # safe on v5e/v6e/v7x
        ),
        cost_estimate=pl.CostEstimate(
            flops=flops, transcendentals=0, bytes_accessed=bytes_accessed),
    )(x_p, w0c, b0c, w1, b1, w2, b2)

    out = out[:batch]

    # L1 regularization terms: weight-only, tiny -> computed once in plain JAX
    # instead of redundantly per grid step inside the kernel.
    reg_skip = jnp.sum(jnp.abs(ws))
    reg_layers = jnp.sum(jnp.abs(w0)) + jnp.sum(jnp.abs(w1)) + jnp.sum(jnp.abs(w2))
    return out, reg_skip, reg_layers


def init_linear(key, in_dim, out_dim):
    """Deterministic Glorot-uniform-style init, matching the torch module's scheme."""
    scale = float(np.sqrt(6.0 / (in_dim + out_dim)))
    kw, kb = jax.random.split(key)
    w = jax.random.uniform(kw, (in_dim, out_dim), jnp.float32, -scale, scale)
    b = jax.random.uniform(kb, (1, out_dim), jnp.float32, -scale, scale)
    return w, b


def init_params(key, num_feature, num_nodes=(20, 10)):
    dims = [num_feature] + list(num_nodes) + [1]
    keys = jax.random.split(key, len(dims))  # len(dims)-1 layers + 1 skip
    params = []
    for i in range(len(dims) - 1):
        w, b = init_linear(keys[i], dims[i], dims[i + 1])
        params += [w, b]
    ws, bs = init_linear(keys[-1], num_feature, 1)
    params += [ws, bs]
    return tuple(params)


def reference_forward(x, params):
    """Plain-JAX reference for correctness checking."""
    w0, b0, w1, b1, w2, b2, ws, bs = params
    y_lr = x @ ws + bs
    h = jnp.maximum(x @ w0 + b0, 0.0)
    h = jnp.maximum(h @ w1 + b1, 0.0)
    h = h @ w2 + b2
    reg_skip = jnp.sum(jnp.abs(ws))
    reg_layers = jnp.sum(jnp.abs(w0)) + jnp.sum(jnp.abs(w1)) + jnp.sum(jnp.abs(w2))
    return h + y_lr, reg_skip, reg_layers


if __name__ == "__main__":
    num_feature = 32
    num_nodes = (20, 10)

    key = jax.random.PRNGKey(0)
    k_x, k_p, k_x2 = jax.random.split(key, 3)
    params = init_params(k_p, num_feature, num_nodes)

    fwd = jax.jit(nnlr_forward)

    # Small case (single grid step) and a larger ragged case that exercises
    # multiple grid steps + row padding.
    x_small = jax.random.normal(k_x, (8, num_feature), jnp.float32)
    x_big = jax.random.normal(k_x2, (2100, num_feature), jnp.float32)

    for x in (x_small, x_big):
        out, reg_skip, reg_layers = fwd(x, params)
        jax.block_until_ready((out, reg_skip, reg_layers))

        ref_out, ref_rs, ref_rl = reference_forward(x, params)
        np.testing.assert_allclose(np.asarray(out), np.asarray(ref_out),
                                   rtol=1e-5, atol=1e-5)
        np.testing.assert_allclose(float(reg_skip), float(ref_rs),
                                   rtol=1e-5, atol=1e-5)
        np.testing.assert_allclose(float(reg_layers), float(ref_rl),
                                   rtol=1e-5, atol=1e-5)

    print("KERNEL_OK")
</pallas_src>

<mosaic_0001>
module attributes {stable_mosaic.version = 11 : i64} {
  func.func @nnlr_kernel(%arg0: i32, %arg1: memref<8x32xf32, #tpu.memory_space<vmem>>, %arg2: memref<32x21xf32, #tpu.memory_space<vmem>>, %arg3: memref<1x21xf32, #tpu.memory_space<vmem>>, %arg4: memref<20x10xf32, #tpu.memory_space<vmem>>, %arg5: memref<1x10xf32, #tpu.memory_space<vmem>>, %arg6: memref<10x1xf32, #tpu.memory_space<vmem>>, %arg7: memref<1x1xf32, #tpu.memory_space<vmem>>, %arg8: memref<8x1xf32, #tpu.memory_space<vmem>>) attributes {dimension_semantics = [#tpu.dimension_semantics<parallel>], iteration_bounds = array<i64: 1>, scalar_prefetch = 0 : i64, scratch_operands = 0 : i64, tpu.core_type = #tpu.core_type<tc>, window_params = [{transform_indices = @transform_0, window_bounds = array<i64: 8, 32>}, {pipeline_mode = #tpu.pipeline_mode<synchronous>, transform_indices = @transform_1, window_bounds = array<i64: 32, 21>}, {pipeline_mode = #tpu.pipeline_mode<synchronous>, transform_indices = @transform_2, window_bounds = array<i64: 1, 21>}, {pipeline_mode = #tpu.pipeline_mode<synchronous>, transform_indices = @transform_3, window_bounds = array<i64: 20, 10>}, {pipeline_mode = #tpu.pipeline_mode<synchronous>, transform_indices = @transform_4, window_bounds = array<i64: 1, 10>}, {pipeline_mode = #tpu.pipeline_mode<synchronous>, transform_indices = @transform_5, window_bounds = array<i64: 10, 1>}, {pipeline_mode = #tpu.pipeline_mode<synchronous>, transform_indices = @transform_6, window_bounds = array<i64: 1, 1>}, {transform_indices = @transform_7, window_bounds = array<i64: 8, 1>}]} {
    %c0 = arith.constant 0 : index
    %c0_0 = arith.constant 0 : index
    %0 = vector.load %arg1[%c0, %c0_0] : memref<8x32xf32, #tpu.memory_space<vmem>>, vector<8x32xf32>
    %c0_1 = arith.constant 0 : index
    %c0_2 = arith.constant 0 : index
    %1 = vector.load %arg2[%c0_1, %c0_2] : memref<32x21xf32, #tpu.memory_space<vmem>>, vector<32x21xf32>
    %cst = arith.constant dense<0.000000e+00> : vector<8x21xf32>
    %2 = tpu.matmul %0, %1, %cst {dimension_numbers = #tpu.dot_dimension_numbers<[1], [0], [0], [1], [0, 0, 1, 1], [], []>} : vector<8x32xf32>, vector<32x21xf32>, vector<8x21xf32> -> vector<8x21xf32>
    %c0_3 = arith.constant 0 : index
    %c0_4 = arith.constant 0 : index
    %3 = vector.load %arg3[%c0_3, %c0_4] : memref<1x21xf32, #tpu.memory_space<vmem>>, vector<1x21xf32>
    %4 = vector.broadcast %3 : vector<1x21xf32> to vector<8x21xf32>
    %5 = arith.addf %2, %4 : vector<8x21xf32>
    %6 = vector.extract_strided_slice %5 {offsets = [0, 20], sizes = [8, 1], strides = [1, 1]} : vector<8x21xf32> to vector<8x1xf32>
    %7 = vector.extract_strided_slice %5 {offsets = [0, 0], sizes = [8, 20], strides = [1, 1]} : vector<8x21xf32> to vector<8x20xf32>
    %cst_5 = arith.constant 0.000000e+00 : f32
    %8 = vector.broadcast %cst_5 : f32 to vector<8x20xf32>
    %9 = arith.maximumf %7, %8 : vector<8x20xf32>
    %c0_6 = arith.constant 0 : index
    %c0_7 = arith.constant 0 : index
    %10 = vector.load %arg4[%c0_6, %c0_7] : memref<20x10xf32, #tpu.memory_space<vmem>>, vector<20x10xf32>
    %cst_8 = arith.constant dense<0.000000e+00> : vector<8x10xf32>
    %11 = tpu.matmul %9, %10, %cst_8 {dimension_numbers = #tpu.dot_dimension_numbers<[1], [0], [0], [1], [0, 0, 1, 1], [], []>} : vector<8x20xf32>, vector<20x10xf32>, vector<8x10xf32> -> vector<8x10xf32>
    %c0_9 = arith.constant 0 : index
    %c0_10 = arith.constant 0 : index
    %12 = vector.load %arg5[%c0_9, %c0_10] : memref<1x10xf32, #tpu.memory_space<vmem>>, vector<1x10xf32>
    %13 = vector.broadcast %12 : vector<1x10xf32> to vector<8x10xf32>
    %14 = arith.addf %11, %13 : vector<8x10xf32>
    %cst_11 = arith.constant 0.000000e+00 : f32
    %15 = vector.broadcast %cst_11 : f32 to vector<8x10xf32>
    %16 = arith.maximumf %14, %15 : vector<8x10xf32>
    %c0_12 = arith.constant 0 : index
    %c0_13 = arith.constant 0 : index
    %17 = vector.load %arg6[%c0_12, %c0_13] : memref<10x1xf32, #tpu.memory_space<vmem>>, vector<10x1xf32>
    %cst_14 = arith.constant dense<0.000000e+00> : vector<8x1xf32>
    %18 = tpu.matmul %16, %17, %cst_14 {dimension_numbers = #tpu.dot_dimension_numbers<[1], [0], [0], [1], [0, 0, 1, 1], [], []>} : vector<8x10xf32>, vector<10x1xf32>, vector<8x1xf32> -> vector<8x1xf32>
    %c0_15 = arith.constant 0 : index
    %c0_16 = arith.constant 0 : index
    %19 = vector.load %arg7[%c0_15, %c0_16] : memref<1x1xf32, #tpu.memory_space<vmem>>, vector<1x1xf32>
    %20 = vector.broadcast %19 : vector<1x1xf32> to vector<8x1xf32>
    %21 = arith.addf %18, %20 : vector<8x1xf32>
    %22 = arith.addf %21, %6 : vector<8x1xf32>
    %c0_17 = arith.constant 0 : index
    %c0_18 = arith.constant 0 : index
    %23 = vector.load %arg8[%c0_17, %c0_18] : memref<8x1xf32, #tpu.memory_space<vmem>>, vector<8x1xf32>
    tpu.vector_store %arg8[%c0_17, %c0_18], %22 {strides = array<i32>} : memref<8x1xf32, #tpu.memory_space<vmem>>, vector<8x1xf32>,
    return
  }
  func.func @transform_0(%arg0: i32) -> (i32, i32) {
    %c0_i32 = arith.constant 0 : i32
    %c0_i32_0 = arith.constant 0 : i32
    return %arg0, %c0_i32 : i32, i32
  }
  func.func @transform_1(%arg0: i32) -> (i32, i32) {
    %c0_i32 = arith.constant 0 : i32
    %c0_i32_0 = arith.constant 0 : i32
    %c0_i32_1 = arith.constant 0 : i32
    return %c0_i32, %c0_i32_0 : i32, i32
  }
  func.func @transform_2(%arg0: i32) -> (i32, i32) {
    %c0_i32 = arith.constant 0 : i32
    %c0_i32_0 = arith.constant 0 : i32
    %c0_i32_1 = arith.constant 0 : i32
    return %c0_i32, %c0_i32_0 : i32, i32
  }
  func.func @transform_3(%arg0: i32) -> (i32, i32) {
    %c0_i32 = arith.constant 0 : i32
    %c0_i32_0 = arith.constant 0 : i32
    %c0_i32_1 = arith.constant 0 : i32
    return %c0_i32, %c0_i32_0 : i32, i32
  }
  func.func @transform_4(%arg0: i32) -> (i32, i32) {
    %c0_i32 = arith.constant 0 : i32
    %c0_i32_0 = arith.constant 0 : i32
    %c0_i32_1 = arith.constant 0 : i32
    return %c0_i32, %c0_i32_0 : i32, i32
  }
  func.func @transform_5(%arg0: i32) -> (i32, i32) {
    %c0_i32 = arith.constant 0 : i32
    %c0_i32_0 = arith.constant 0 : i32
    %c0_i32_1 = arith.constant 0 : i32
    return %c0_i32, %c0_i32_0 : i32, i32
  }
  func.func @transform_6(%arg0: i32) -> (i32, i32) {
    %c0_i32 = arith.constant 0 : i32
    %c0_i32_0 = arith.constant 0 : i32
    %c0_i32_1 = arith.constant 0 : i32
    return %c0_i32, %c0_i32_0 : i32, i32
  }
  func.func @transform_7(%arg0: i32) -> (i32, i32) {
    %c0_i32 = arith.constant 0 : i32
    %c0_i32_0 = arith.constant 0 : i32
    return %arg0, %c0_i32 : i32, i32
  }
}

</mosaic_0001>

<bundles_post_ra>
// kernel: nnlr_forward.1
= control target key start
LH: loop header
LB: loop body
LE: loop exit
PB: predicated region body
PF: predicated region fallthrough
CT: control target
= control target key end

     0   :  { %vm37_vm0 = vcmask 261120   ;;  %vm73_vm1 = vcmask 1043456   ;;  %vm69_vm2 = vcmask 162816   ;;  %s152_s17 = smov 108   ;;  %vm108_vm3 = vcmask 1041408   ;;  %s235_s1 = inlined_call_operand.vmem [shape: f32[32,21], index: 1, kind: input, shape index: {}]   ;;  %s236_s2 = inlined_call_operand.vmem [shape: f32[1,21], index: 2, kind: input, shape index: {}]   ;;  %s237_s0 = inlined_call_operand.vmem [shape: f32[8,32], index: 0, kind: input, shape index: {}]   ;;  %s238_s3 = inlined_call_operand.vmem [shape: f32[20,10], index: 3, kind: input, shape index: {}]   ;;  %s239_s4 = inlined_call_operand.vmem [shape: f32[1,10], index: 4, kind: input, shape index: {}]   ;;  %s240_s5 = inlined_call_operand.vmem [shape: f32[10,1], index: 5, kind: input, shape index: {}]   ;;  %s241_s6 = inlined_call_operand.<no memory space> [shape: f32[1,1], index: 6, kind: input, shape index: {}]   ;;  %s242_s7 = inlined_call_operand.vmem [shape: f32[8,1], index: 7, kind: output, shape index: {}]  }
   0x1   :  { %v32_v0 = vld [vmem:[%s235_s1 + $0x18] sm:$0xff]  ;;  %v31_v1 = vld [vmem:[%s235_s1 + $0x10] sm:$0xff]  ;;  %v30_v2 = vld [vmem:[%s235_s1 + $0x8] sm:$0xff]  ;;  %v12_v14 = vstv %s241_s6  ;;  %vm104_vm4 = vcmask 80896   ;;  %vm137_vm5 = vcmask 7168  }
   0x2   :  { %53 = vmatpush.msra.mxu0 %v32_v0  ;;  %v29_v3 = vld [vmem:[%s235_s1] sm:$0xff]  ;;  %v64_v5 = vld [vmem:[%s238_s3 + $0x10] sm:$0xf]  ;;  %v63_v6 = vld [vmem:[%s238_s3 + $0x8] sm:$0xff]  ;;  %13 = vst [vmem:[#allocation2] sm:$0x1] %v12_v14 }
   0x3   :  { %v28_v4 = vld [vmem:[%s237_s0] sm:$0xff]  ;;  %144 = vmatpush.msk.msra.mxu1 %vm73_vm1, %v64_v5  ;;  %v99_v12 = vld [vmem:[%s240_s5 + $0x8] sm:$0x3] }
   0x4   :  { %54 = vmatpush.msra.mxu0 %v31_v1  ;;  %v62_v7 = vld [vmem:[%s238_s3] sm:$0xff]  ;;  %146 = vmatpush.msk.msra.mxu2 %vm108_vm3, %v99_v12 }
   0x5   :  { %91 = vmatpush.msra.mxu1 %v63_v6  ;;  %v149_v8 = vld [vmem:[%s236_s2] ss:$0 sm:$0xff] }
   0x6   :  { %55 = vmatpush.msra.mxu0 %v30_v2  ;;  %v98_v13 = vld [vmem:[%s240_s5] sm:$0xff] }
   0x7   :  { %92 = vmatpush.msra.mxu1 %v62_v7  ;;  %127 = vmatpush.msra.mxu2 %v98_v13  ;;  %v150_v15 = vld [vmem:[%s239_s4] ss:$0 sm:$0xff] }
   0x8   :  { %56 = vmatpush.msra.mxu0 %v29_v3 }
   0x9   :  { %143 = vmatmul.msk.f32.vlgmr.msra.gmra.mxu0 %vm37_vm0, %v28_v4  ;;  %v151_v19 = vld [vmem:[#allocation2] ss:$0 sm:$0xff] }
  0x86   :  { %v58_v9 = vpop.f32.mrf.mxu0 }
  0x87   :  { %v59_v10 = vadd.f32 %v149_v8, %v58_v9 }
  0x89   :  { %v61_v11 = vmax.f32 %v59_v10, 0.0  ;;  %133 = vrot.lane.b32.xlu0 %v59_v10, %s152_s17 }
  0x8b   :  { %145 = vmatmul.msk.f32.vlgmr.msra.gmra.mxu1 %vm69_vm2, %v61_v11 }
  0xfb   :  { %v134_v22 = vpop.permute.xlu0 %133 }
 0x108   :  { %v94_v16 = vpop.f32.mrf.mxu1 }
 0x109   :  { %v95_v17 = vadd.f32 %v150_v15, %v94_v16 }
 0x10b   :  { %v97_v18 = vmax.f32 %v95_v17, 0.0 }
 0x10d   :  { %147 = vmatmul.msk.f32.vlgmr.msra.gmra.mxu2 %vm104_vm4, %v97_v18 }
 0x190   :  { %v129_v20 = vpop.f32.mrf.mxu2 }
 0x191   :  { %v130_v21 = vadd.f32 %v151_v19, %v129_v20 }
 0x193   :  { %v136_v23 = vadd.f32 %v134_v22, %v130_v21 }
 0x195   :  { %138 = vst.msk [vmem:[%s242_s7] sm:$0xff] %vm137_vm5, %v136_v23 }

</bundles_post_ra>
